<compile_context>
chip_gen: v7x
topology: tpu7x:2x2x1
jax: 0.10.0
libtpu: 0.0.40
codegen_flags: <defaults>
</compile_context>

<pallas_src>
import functools

import jax
import jax.numpy as jnp
from jax.experimental import pallas as pl
from jax.experimental.pallas import tpu as pltpu


def _label_smoothing_kernel(x_ref, t_ref, o_ref, *, confidence, smoothing,
                            n_rows, rc):
    tm, c = x_ref.shape
    num_chunks = tm // rc
    tile_row0 = pl.program_id(0) * tm

    # Loop-invariant constants, hoisted (JAX does not CSE broadcast_in_dim).
    col = jax.lax.broadcasted_iota(jnp.int32, (rc, c), 1)            # (RC, C)
    row_base = jax.lax.broadcasted_iota(jnp.int32, (rc, 1), 0) + tile_row0
    ones_c = jnp.ones((c, 1), dtype=jnp.float32)                     # MXU reducer

    def chunk_body(ci, acc):
        r0 = pl.multiple_of(ci * rc, rc)
        rows_valid = (row_base + r0) < n_rows                        # (RC, 1)

        xs = x_ref[pl.ds(r0, rc), :]                                 # (RC, C) input dtype
        ts = t_ref[pl.ds(r0, rc), :]                                 # (RC, 1) int32
        # Ragged last tile: out-of-range rows hold garbage (possibly Inf/NaN).
        # Clamp them so nothing non-finite enters exp/log; their loss is also
        # masked out below.
        xs = jnp.where(rows_valid, xs, 0)

        # Row max in the input dtype (exact; bf16 halves the XLU reduce work),
        # upcast only the (RC, 1) result.
        m = jnp.max(xs, axis=-1, keepdims=True).astype(jnp.float32)  # (RC, 1)

        xf = xs.astype(jnp.float32)              # upcast at the point of use
        p = jnp.exp(xf - m)                      # (RC, C), EUP

        # Fused per-row weighted sum: reduces to
        #   confidence * x[row, target[row]] + smoothing * mean_k x[row, k]
        w = jnp.where(col == ts, confidence * xf, 0.0) + (smoothing / c) * xf

        # Row reductions on the otherwise-idle MXU ((RC,C) x (C,1) dots)
        # instead of cross-lane XLU reductions.
        sum_exp = jnp.dot(p, ones_c, preferred_element_type=jnp.float32)  # (RC, 1)
        wsum = jnp.dot(w, ones_c, preferred_element_type=jnp.float32)     # (RC, 1)

        # loss_row = (m + lse) - (confidence * x_t + smoothing * mean(x))
        loss = (m + jnp.log(sum_exp)) - wsum                              # (RC, 1)
        loss = jnp.where(rows_valid, loss, 0.0)
        return acc + jnp.sum(loss, keepdims=True)                         # (1, 1)

    total = jax.lax.fori_loop(0, num_chunks, chunk_body,
                              jnp.zeros((1, 1), jnp.float32))
    o_ref[0, 0] = total[0, 0]                    # per-tile partial sum (SMEM)


def _round_up(v, m):
    return ((v + m - 1) // m) * m


def _choose_tiling(n, c, itemsize, tile_budget_bytes=4 << 20):
    """Return (tm, rc): rows per grid tile and rows per in-kernel chunk."""
    n8 = _round_up(max(n, 1), 8)
    # Size the DMA tile by bytes (MiB scale), not a fixed row cap.
    tm = max(8, (tile_budget_bytes // max(1, c * itemsize)) // 8 * 8)
    # Keep >= 2 row tiles so the 'parallel' grid axis can use both v7x cores.
    tm = min(tm, max(8, _round_up(-(-n // 2), 8)))
    tm = min(tm, n8)
    # In-kernel chunk bounds the f32 working set; tm must be a multiple of it
    # so chunk slices never leave the VMEM tile.
    rc = min(256, tm)
    tm = max(rc, (tm // rc) * rc)
    return tm, rc


def label_smoothing_loss(x, target, smoothing=0.1):
    """x: (N, C) float logits (f32 or bf16); target: (N,) int class indices."""
    n, c = x.shape
    confidence = 1.0 - smoothing
    itemsize = jnp.dtype(x.dtype).itemsize

    tm, rc = _choose_tiling(n, c, itemsize)
    num_tiles = pl.cdiv(n, tm)

    # Only the tiny targets are touched; the (N, C) logits are passed through
    # untouched (no jnp.pad copy of x).
    target_col = target.astype(jnp.int32).reshape(n, 1)

    kernel = functools.partial(
        _label_smoothing_kernel,
        confidence=confidence, smoothing=smoothing, n_rows=n, rc=rc)

    # VMEM: double-buffered input + target tiles, chunk-sized f32 temporaries,
    # headroom.  Never below the 32 MiB default, never above 48 MiB (v7x has
    # only 64 MiB physical per TensorCore).
    in_tile = tm * c * itemsize
    t_tile = tm * 4
    chunk_f32 = rc * c * 4
    vmem_limit = int(min(48 << 20,
                         max(32 << 20,
                             2 * (in_tile + t_tile) + 8 * chunk_f32 + (4 << 20))))

    partials = pl.pallas_call(
        kernel,
        out_shape=jax.ShapeDtypeStruct((num_tiles, 1), jnp.float32),
        grid=(num_tiles,),
        in_specs=[
            pl.BlockSpec((tm, c), lambda i: (i, 0)),      # logits tile (VMEM)
            pl.BlockSpec((tm, 1), lambda i: (i, 0)),      # target tile (VMEM)
        ],
        out_specs=pl.BlockSpec((1, 1), lambda i: (i, 0),
                               memory_space=pltpu.SMEM),  # per-tile partial sum
        compiler_params=pltpu.CompilerParams(
            dimension_semantics=("parallel",),
            vmem_limit_bytes=vmem_limit,
        ),
    )(x, target_col)

    return jnp.sum(partials) / jnp.float32(n)


def _reference(x, target, smoothing=0.1):
    confidence = 1.0 - smoothing
    logprobs = jax.nn.log_softmax(x, axis=-1)
    nll = -jnp.take_along_axis(logprobs, target[:, None], axis=-1)[:, 0]
    smooth = -jnp.mean(logprobs, axis=-1)
    return jnp.mean(confidence * nll + smoothing * smooth)


if __name__ == "__main__":
    key = jax.random.PRNGKey(0)
    kx, kt, kx2, kt2, kx3, kt3 = jax.random.split(key, 6)

    # Test 1: small f32 case (single tile, single chunk).
    N, C = 8, 32
    x = jax.random.normal(kx, (N, C), dtype=jnp.float32)
    target = jax.random.randint(kt, (N,), 0, C, dtype=jnp.int32)
    loss = label_smoothing_loss(x, target, smoothing=0.1)
    jax.block_until_ready(loss)
    ref = _reference(x, target, smoothing=0.1)
    assert jnp.allclose(loss, ref, atol=1e-4, rtol=1e-4), (loss, ref)

    # Test 2: bf16 logits, multiple row tiles, ragged last tile, chunked loop.
    N2, C2 = 1040, 128
    x2 = jax.random.normal(kx2, (N2, C2), dtype=jnp.float32).astype(jnp.bfloat16)
    target2 = jax.random.randint(kt2, (N2,), 0, C2, dtype=jnp.int32)
    loss2 = label_smoothing_loss(x2, target2, smoothing=0.1)
    jax.block_until_ready(loss2)
    ref2 = _reference(x2.astype(jnp.float32), target2, smoothing=0.1)
    assert jnp.allclose(loss2, ref2, atol=1e-4, rtol=1e-4), (loss2, ref2)

    # Test 3: f32, N not a multiple of 8 (un-padded ragged edge exercised).
    N3, C3 = 1037, 64
    x3 = jax.random.normal(kx3, (N3, C3), dtype=jnp.float32)
    target3 = jax.random.randint(kt3, (N3,), 0, C3, dtype=jnp.int32)
    loss3 = label_smoothing_loss(x3, target3, smoothing=0.1)
    jax.block_until_ready(loss3)
    ref3 = _reference(x3, target3, smoothing=0.1)
    assert jnp.allclose(loss3, ref3, atol=1e-4, rtol=1e-4), (loss3, ref3)

    print("KERNEL_OK")
</pallas_src>

<mosaic_0001>
module attributes {stable_mosaic.version = 11 : i64} {
  func.func @_label_smoothing_kernel(%arg0: i32, %arg1: memref<8x32xf32, #tpu.memory_space<vmem>>, %arg2: memref<8x1xi32, #tpu.memory_space<vmem>>, %arg3: memref<1x1xf32, #tpu.memory_space<smem>>) attributes {dimension_semantics = [#tpu.dimension_semantics<parallel>], iteration_bounds = array<i64: 1>, scalar_prefetch = 0 : i64, scratch_operands = 0 : i64, tpu.core_type = #tpu.core_type<tc>, window_params = [{transform_indices = @transform_0, window_bounds = array<i64: 8, 32>}, {transform_indices = @transform_1, window_bounds = array<i64: 8, 1>}, {transform_indices = @transform_2, window_bounds = array<i64: 1, 1>}]} {
    %c8_i32 = arith.constant 8 : i32
    %0 = arith.muli %arg0, %c8_i32 : i32
    %1 = tpu.iota {dimensions = array<i32: 1>} : vector<8x32xi32>
    %2 = tpu.iota {dimensions = array<i32: 0>} : vector<8x1xi32>
    %3 = vector.broadcast %0 : i32 to vector<8x1xi32>
    %4 = arith.addi %2, %3 : vector<8x1xi32>
    %cst = arith.constant 1.000000e+00 : f32
    %5 = vector.broadcast %cst : f32 to vector<32x1xf32>
    %cst_0 = arith.constant 0.000000e+00 : f32
    %6 = vector.broadcast %cst_0 : f32 to vector<1x1xf32>
    %c0_i32 = arith.constant 0 : i32
    %c8_i32_1 = arith.constant 8 : i32
    %7 = arith.muli %c0_i32, %c8_i32_1 : i32
    %8 = tpu.assume_multiple %7, 8 : i32
    %9 = vector.broadcast %8 : i32 to vector<8x1xi32>
    %10 = arith.addi %4, %9 : vector<8x1xi32>
    %c8_i32_2 = arith.constant 8 : i32
    %11 = vector.broadcast %c8_i32_2 : i32 to vector<8x1xi32>
    %12 = arith.cmpi slt, %10, %11 : vector<8x1xi32>
    %13 = arith.index_cast %8 : i32 to index
    %c0 = arith.constant 0 : index
    %14 = vector.load %arg1[%13, %c0] : memref<8x32xf32, #tpu.memory_space<vmem>>, vector<8x32xf32>
    %15 = arith.index_cast %8 : i32 to index
    %c0_3 = arith.constant 0 : index
    %16 = vector.load %arg2[%15, %c0_3] : memref<8x1xi32, #tpu.memory_space<vmem>>, vector<8x1xi32>
    %c0_i32_4 = arith.constant 0 : i32
    %17 = arith.sitofp %c0_i32_4 : i32 to f32
    %18 = vector.shape_cast %12 : vector<8x1xi1> to vector<8x1xi1>
    %19 = vector.broadcast %18 : vector<8x1xi1> to vector<8x32xi1>
    %20 = vector.broadcast %17 : f32 to vector<8x32xf32>
    %21 = arith.select %19, %14, %20 : vector<8x32xi1>, vector<8x32xf32>
    %cst_5 = arith.constant dense<0xFF800000> : vector<8xf32>
    %22 = vector.multi_reduction <maximumf>, %21, %cst_5 [1] : vector<8x32xf32> to vector<8xf32>
    %23 = vector.shape_cast %22 : vector<8xf32> to vector<8x1xf32>
    %24 = vector.broadcast %23 : vector<8x1xf32> to vector<8x32xf32>
    %25 = arith.subf %21, %24 : vector<8x32xf32>
    %26 = math.exp %25 : vector<8x32xf32>
    %27 = vector.broadcast %16 : vector<8x1xi32> to vector<8x32xi32>
    %28 = arith.cmpi eq, %1, %27 : vector<8x32xi32>
    %cst_6 = arith.constant 0.899999976 : f32
    %29 = vector.broadcast %cst_6 : f32 to vector<8x32xf32>
    %30 = arith.mulf %29, %21 : vector<8x32xf32>
    %cst_7 = arith.constant 0.000000e+00 : f32
    %31 = vector.broadcast %cst_7 : f32 to vector<8x32xf32>
    %32 = arith.select %28, %30, %31 : vector<8x32xi1>, vector<8x32xf32>
    %cst_8 = arith.constant 3.125000e-03 : f32
    %33 = vector.broadcast %cst_8 : f32 to vector<8x32xf32>
    %34 = arith.mulf %33, %21 : vector<8x32xf32>
    %35 = arith.addf %32, %34 : vector<8x32xf32>
    %cst_9 = arith.constant dense<0.000000e+00> : vector<8x1xf32>
    %36 = tpu.matmul %26, %5, %cst_9 {dimension_numbers = #tpu.dot_dimension_numbers<[1], [0], [0], [1], [0, 0, 1, 1], [], []>} : vector<8x32xf32>, vector<32x1xf32>, vector<8x1xf32> -> vector<8x1xf32>
    %cst_10 = arith.constant dense<0.000000e+00> : vector<8x1xf32>
    %37 = tpu.matmul %35, %5, %cst_10 {dimension_numbers = #tpu.dot_dimension_numbers<[1], [0], [0], [1], [0, 0, 1, 1], [], []>} : vector<8x32xf32>, vector<32x1xf32>, vector<8x1xf32> -> vector<8x1xf32>
    %38 = math.log %36 : vector<8x1xf32>
    %39 = arith.addf %23, %38 : vector<8x1xf32>
    %40 = arith.subf %39, %37 : vector<8x1xf32>
    %cst_11 = arith.constant 0.000000e+00 : f32
    %41 = vector.broadcast %cst_11 : f32 to vector<8x1xf32>
    %42 = arith.select %12, %40, %41 : vector<8x1xi1>, vector<8x1xf32>
    %43 = vector.shape_cast %42 : vector<8x1xf32> to vector<1x8x1xf32>
    %cst_12 = arith.constant dense<0.000000e+00> : vector<1xf32>
    %44 = vector.multi_reduction <add>, %43, %cst_12 [1, 2] : vector<1x8x1xf32> to vector<1xf32>
    %45 = vector.shape_cast %44 : vector<1xf32> to vector<1x1x1xf32>
    %46 = vector.extract %45[0, 0, 0] : f32 from vector<1x1x1xf32>
    %47 = vector.broadcast %46 : f32 to vector<1x1xf32>
    %48 = arith.addf %6, %47 : vector<1x1xf32>
    %c1_i32 = arith.constant 1 : i32
    %49 = vector.extract %48[0, 0] : f32 from vector<1x1xf32>
    %c0_13 = arith.constant 0 : index
    %c0_14 = arith.constant 0 : index
    %50 = memref.load %arg3[%c0_13, %c0_14] : memref<1x1xf32, #tpu.memory_space<smem>>
    memref.store %49, %arg3[%c0_13, %c0_14] : memref<1x1xf32, #tpu.memory_space<smem>>
    return
  }
  func.func @transform_0(%arg0: i32) -> (i32, i32) {
    %c0_i32 = arith.constant 0 : i32
    %c0_i32_0 = arith.constant 0 : i32
    return %arg0, %c0_i32 : i32, i32
  }
  func.func @transform_1(%arg0: i32) -> (i32, i32) {
    %c0_i32 = arith.constant 0 : i32
    %c0_i32_0 = arith.constant 0 : i32
    return %arg0, %c0_i32 : i32, i32
  }
  func.func @transform_2(%arg0: i32) -> (i32, i32) {
    %c0_i32 = arith.constant 0 : i32
    %c0_i32_0 = arith.constant 0 : i32
    return %arg0, %c0_i32 : i32, i32
  }
}

</mosaic_0001>

<bundles_post_ra>
// kernel: tpu_custom_call.1
= control target key start
LH: loop header
LB: loop body
LE: loop exit
PB: predicated region body
PF: predicated region fallthrough
CT: control target
= control target key end

     0   :  { %vm27_vm0 = vcmask 261120   ;;  %s331_s0 = inlined_call_operand.vmem [shape: f32[8,32], index: 0, kind: input, shape index: {}]   ;;  %s332_s1 = inlined_call_operand.vmem [shape: s32[8,1], index: 1, kind: input, shape index: {}]   ;;  %s333_s2 = inlined_call_operand.hbm [shape: f32[1,1], index: 2, kind: output, shape index: {}]  }
   0x1   :  { %v22_v0 = vld [vmem:[%s331_s0] sm:$0xff] }
   0x2   :  { %7 = vsyncpa [#allocation3], 0  ;;  %v28_v1 = vsel %vm27_vm0, %v22_v0, -inf  ;;  %v289_v2 = vmov 0   ;;  %v23_v3 = vld [vmem:[%s332_s1] sm:$0xff]  ;;  %v290_v4 = vmov 0.0|0.0   ;;  %v13_v9 = vlaneseq }
   0x3   :  { %272 = vset.pattern.permute.xlu0 %v289_v2  ;;  %256 = vmatprep.subr.bf16.mxu0 %v290_v4  ;;  %vm291_vm1 = vmmov 0   ;;  %v292_v5 = vmov 0.0   ;;  %v293_v6 = vmov 1.0|1.0   ;;  %v38_v12 = vmul.f32 0.9, %v22_v0 }
   0x4   :  { %29 = vmax.xlane.f32.xlu0 %v28_v1  ;;  %242 = vmatprep.mubr.msk.f32.mxu0 %vm291_vm1, %v292_v5  ;;  %v14_v11 = vand.u32 127, %v13_v9  ;;  %v40_v13 = vmul.f32 0.003125, %v22_v0  ;;  %vm193_vm3 = vcmask 7168   ;;  %s277_s14 = scalar_lea.hbm %s333_s2, 16 }
   0x5   :  { %257 = vmatpush3.bf16.msra.mxu0 %v293_v6  ;;  %260 = vmatprep.subr.bf16.mxu1 %v290_v4  ;;  %p278_p0 = scmp.ne.s32.totalorder %s333_s2, %s277_s14  ;;  %p281_p1 = scmp.lt.u32.totalorder %s277_s14, %s333_s2 }
   0x6   :  { %258 = vmatprep.subr.bf16.mxu0 %v290_v4  ;;  %261 = vmatpush3.bf16.msra.mxu1 %v293_v6 }
   0x7   :  { %262 = vmatprep.subr.bf16.mxu1 %v290_v4  ;;  %253 = vmatprep.mubr.msk.f32.mxu1 %vm291_vm1, %v292_v5  ;;  %p283_p2 = pnand %p281_p1, %p278_p0 }
   0x9   :  { %259 = vmatpush3.bf16.msra.mxu0 %v293_v6 }
   0xa   :  { %263 = vmatpush3.bf16.msra.mxu1 %v293_v6 }
  0x1a   :  { %35 = vperm.xlu0 %272, %v23_v3  }
  0x91   :  { %v30_v7 = vpop.xlane.xlu0 %29 }
  0x92   :  { %v31_v8 = vsub.f32 %v22_v0, %v30_v7 }
  0x94   :  { %v32_v10 = vmul.f32 1.442695, %v31_v8 }
  0x96   :  { %273 = vpow2.f32 %v32_v10 }
  0x99   :  { %v36_v14 = vpop.permute.xlu0 %35 }
  0x9a   :  { %vm37_vm2 = vcmp.eq.s32.totalorder %v14_v11, %v36_v14 }
  0x9b   :  { %v39_v15 = vsel %vm37_vm2, %v38_v12, 0.0 }
  0x9c   :  { %v41_v16 = vadd.f32 %v40_v13, %v39_v15 }
  0x9e   :  { %254 = vmatmul.mubr.msk.f32.vlgmr.msra.gmra.mrb[0].mxu1 %vm27_vm0, %v41_v16 }
  0xa0   :  { %v274_v17 = vpop.eup %273 }
  0xa1   :  { %243 = vmatmul.mubr.msk.f32.vlgmr.msra.gmra.mrb[0].mxu0 %vm27_vm0, %v274_v17 }
 0x171   :  { %v184_v18 = vpop.f32.mrb[0].mxu1 }
 0x172   :  { %v255_v19 = vpop.f32.mrb[1].mxu1 }
 0x174   :  { %v111_v20 = vpop.f32.mrb[0].mxu0 }
 0x175   :  { %275 = vlog2.f32 %v111_v20  ;;  %v244_v21 = vpop.f32.mrb[1].mxu0 }
 0x17f   :  { %v276_v22 = vpop.eup %275 }
 0x180   :  { %v189_v23 = vmul.f32 0.6931472, %v276_v22 }
 0x182   :  { %v190_v24 = vadd.f32 %v189_v23, %v30_v7 }
 0x184   :  { %v191_v25 = vsub.f32 %v190_v24, %v184_v18 }
 0x186   :  { %v194_v26 = vsel %vm193_vm3, %v191_v25, 0.0 }
 0x187   :  { %195 = vadd.xlane.f32.xlu1 %v194_v26 }
 0x214   :  { %v196_v27 = vpop.xlane.xlu1 %195 }
 0x215   :  { %v197_v28 = vrot.slane %v196_v27, 4 }
 0x217   :  { %v198_v29 = vadd.f32 %v197_v28, %v196_v27 }
 0x219   :  { %v199_v30 = vrot.slane %v198_v29, 2 }
 0x21b   :  { %v200_v31 = vadd.f32 %v199_v30, %v198_v29 }
 0x21d   :  { %v201_v32 = vrot.slane %v200_v31, 1 }
 0x21f   :  { %v202_v33 = vadd.f32 %v201_v32, %v200_v31 }
 0x221   :  { %264 = vpush %v202_v33 }
 0x252   :  { %s265_s0 = spop %264 }
 0x253   :  { %208 = sst [smem:[#allocation2]] %s265_s0 }
 0x254   :  { %286 = shalt.err (!%p283_p2)
}
 0x255   :  { %s294_s19 = smov [#allocation2]  }
 0x256   :  { %216 = dma.smem_to_hbm %s294_s19, 16, %s333_s2, [#allocation3]  }
 0x257   :  { %287 = dma.done.wait [#allocation3], 16  }
 0x258   :  { %288 = vsyncadd [#allocation3], 4294967280 }
 0x259   :  { %220 = sfence }
 0x25a   :  { %221 = vsyncpa [#allocation3], 1 }

</bundles_post_ra>
